<compile_context>
chip_gen: v7x
topology: tpu7x:2x2x1
jax: 0.10.0
libtpu: 0.0.40
codegen_flags: <defaults>
</compile_context>

<pallas_src>
import jax
import jax.numpy as jnp
from jax.experimental import pallas as pl
from jax.experimental.pallas import tpu as pltpu


def _round_up(x, m):
    return ((x + m - 1) // m) * m


_VMEM_BUDGET_BYTES = 20 * 1024 * 1024   # tile-sizing budget (fits every generation)
_VMEM_LIMIT_BYTES = 40 * 1024 * 1024    # raised scoped-VMEM limit (v5e default is 16 MiB)


def policy_kernel(x_ref, w_ref, b_ref, o_ref):
    # x_ref: (TB, D_in)      bf16 row tile of activations
    # w_ref: (D_in, D_pad)   bf16 pre-transposed weight, VMEM-resident (constant index_map)
    # b_ref: (1, D_pad)      f32 bias; padded lanes hold -1e30
    # o_ref: (TB, D_pad)     f32 lane-dense probabilities
    logits = jnp.dot(x_ref[...], w_ref[...],
                     preferred_element_type=jnp.float32) + b_ref[...]
    # Numerically stable softmax along the lane dim; padded lanes have
    # logits ~ -1e30 so exp() is exactly 0 and they never contribute.
    m = jnp.max(logits, axis=-1, keepdims=True)
    e = jnp.exp(logits - m)
    denom = jnp.sum(e, axis=-1, keepdims=True)
    o_ref[...] = (e / denom).astype(o_ref.dtype)   # exact normalization


def prepare_policy_params(w, b, *, compute_dtype=jnp.bfloat16):
    """One-time (init / checkpoint-load) conversion of PyTorch nn.Linear params.

    w: (D_out, D_in), b: (D_out,) -> w_t: (D_in, D_pad) compute_dtype,
                                     b_pad: (1, D_pad) f32, dead lanes = -1e30.
    """
    d_out, d_in = w.shape
    d_pad = max(128, _round_up(d_out, 128))
    w_t = jnp.zeros((d_in, d_pad), compute_dtype)
    w_t = w_t.at[:, :d_out].set(jnp.asarray(w, compute_dtype).T)
    b_pad = jnp.full((1, d_pad), -1e30, jnp.float32)
    b_pad = b_pad.at[0, :d_out].set(jnp.asarray(b, jnp.float32))
    return w_t, b_pad


def _choose_row_tile(B, d_in, d_pad, x_itemsize, out_itemsize, block_b, align):
    if B <= align:
        return B              # one full-dim block (any size legal when block == array dim)
    # >= 2 grid steps whenever B allows it, so both v7x TensorCores get work.
    tb = min(block_b, _round_up(pl.cdiv(B, 2), align))
    # Cap so double-buffered x/out tiles + the resident W/b fit the VMEM budget.
    resident = 2 * (d_in * d_pad * x_itemsize + d_pad * 4)
    per_row = 2 * (d_in * x_itemsize + d_pad * out_itemsize)
    fit = ((_VMEM_BUDGET_BYTES - resident) // per_row) // align * align
    return max(align, min(tb, fit))


def policy_network_forward(x, w_t, b_pad, *, d_out, block_b=512):
    """softmax(x @ W.T + b, axis=-1) using pre-converted params."""
    B, d_in = x.shape
    d_pad = w_t.shape[1]
    compute_dtype = w_t.dtype

    # Feed the MXU in the weight's (bf16) dtype. In a real model the upstream
    # layer would already emit bf16 / this convert fuses with the producer.
    if x.dtype != compute_dtype:
        x = x.astype(compute_dtype)

    x_itemsize = jnp.dtype(compute_dtype).itemsize
    align = 16 if x_itemsize == 2 else 8          # bf16 sublane packing
    tb = _choose_row_tile(B, d_in, d_pad, x_itemsize, 4, block_b, align)
    grid = (pl.cdiv(B, tb),)   # ragged last block is masked by Pallas; no jnp.pad of x

    out = pl.pallas_call(
        policy_kernel,
        out_shape=jax.ShapeDtypeStruct((B, d_pad), jnp.float32),
        grid=grid,
        in_specs=[
            pl.BlockSpec((tb, d_in), lambda i: (i, 0)),     # new row tile each step
            pl.BlockSpec((d_in, d_pad), lambda i: (0, 0)),  # W: VMEM-resident
            pl.BlockSpec((1, d_pad), lambda i: (0, 0)),     # b: VMEM-resident
        ],
        out_specs=pl.BlockSpec((tb, d_pad), lambda i: (i, 0)),
        compiler_params=pltpu.CompilerParams(
            dimension_semantics=("parallel",),  # batch tiles independent -> v7x megacore
            vmem_limit_bytes=_VMEM_LIMIT_BYTES,
        ),
    )(x, w_t, b_pad)

    # Strip lane padding. XLA fuses this slice with the consumer; downstream
    # code that can consume the padded block may skip it entirely.
    return out[:, :d_out]


if __name__ == "__main__":
    # Small shapes consistent with the module: batch=8, input_size=32, output_size=16.
    B, D_in, D_out = 8, 32, 16

    key = jax.random.PRNGKey(0)
    kx, kw, kb = jax.random.split(key, 3)

    # torch.nn.Linear default init: U(-1/sqrt(fan_in), 1/sqrt(fan_in)).
    bound = 1.0 / (D_in ** 0.5)
    w = jax.random.uniform(kw, (D_out, D_in), jnp.float32, -bound, bound)
    b = jax.random.uniform(kb, (D_out,), jnp.float32, -bound, bound)
    x = jax.random.normal(kx, (B, D_in), jnp.float32)

    # Param conversion happens ONCE, off the per-call hot path.
    w_t, b_pad = prepare_policy_params(w, b)

    forward = jax.jit(policy_network_forward, static_argnames=("d_out", "block_b"))
    out = jax.block_until_ready(forward(x, w_t, b_pad, d_out=D_out))

    # Reference in f32; tolerance covers the bf16 matmul inputs.
    ref = jax.nn.softmax(x @ w.T + b, axis=-1)
    assert out.shape == (B, D_out)
    assert jnp.allclose(out, ref, atol=1e-2, rtol=1e-2), float(jnp.max(jnp.abs(out - ref)))
    assert jnp.allclose(jnp.sum(out, axis=-1), 1.0, atol=1e-4)

    print("KERNEL_OK")
</pallas_src>

<mosaic_0001>
module attributes {stable_mosaic.version = 11 : i64} {
  func.func @policy_kernel(%arg0: i32, %arg1: memref<8x32xbf16, #tpu.memory_space<vmem>>, %arg2: memref<32x128xbf16, #tpu.memory_space<vmem>>, %arg3: memref<1x128xf32, #tpu.memory_space<vmem>>, %arg4: memref<8x128xf32, #tpu.memory_space<vmem>>) attributes {dimension_semantics = [#tpu.dimension_semantics<parallel>], iteration_bounds = array<i64: 1>, scalar_prefetch = 0 : i64, scratch_operands = 0 : i64, tpu.core_type = #tpu.core_type<tc>, window_params = [{transform_indices = @transform_0, window_bounds = array<i64: 8, 32>}, {pipeline_mode = #tpu.pipeline_mode<synchronous>, transform_indices = @transform_1, window_bounds = array<i64: 32, 128>}, {pipeline_mode = #tpu.pipeline_mode<synchronous>, transform_indices = @transform_2, window_bounds = array<i64: 1, 128>}, {transform_indices = @transform_3, window_bounds = array<i64: 8, 128>}]} {
    %c0 = arith.constant 0 : index
    %c0_0 = arith.constant 0 : index
    %0 = vector.load %arg1[%c0, %c0_0] : memref<8x32xbf16, #tpu.memory_space<vmem>>, vector<8x32xbf16>
    %c0_1 = arith.constant 0 : index
    %c0_2 = arith.constant 0 : index
    %1 = vector.load %arg2[%c0_1, %c0_2] : memref<32x128xbf16, #tpu.memory_space<vmem>>, vector<32x128xbf16>
    %cst = arith.constant dense<0.000000e+00> : vector<8x128xf32>
    %2 = tpu.matmul %0, %1, %cst {dimension_numbers = #tpu.dot_dimension_numbers<[1], [0], [0], [1], [0, 0, 1, 1], [], []>} : vector<8x32xbf16>, vector<32x128xbf16>, vector<8x128xf32> -> vector<8x128xf32>
    %c0_3 = arith.constant 0 : index
    %c0_4 = arith.constant 0 : index
    %3 = vector.load %arg3[%c0_3, %c0_4] : memref<1x128xf32, #tpu.memory_space<vmem>>, vector<1x128xf32>
    %4 = vector.broadcast %3 : vector<1x128xf32> to vector<8x128xf32>
    %5 = arith.addf %2, %4 : vector<8x128xf32>
    %cst_5 = arith.constant dense<0xFF800000> : vector<8xf32>
    %6 = vector.multi_reduction <maximumf>, %5, %cst_5 [1] : vector<8x128xf32> to vector<8xf32>
    %7 = vector.shape_cast %6 : vector<8xf32> to vector<8x1xf32>
    %8 = vector.broadcast %7 : vector<8x1xf32> to vector<8x128xf32>
    %9 = arith.subf %5, %8 : vector<8x128xf32>
    %10 = math.exp %9 : vector<8x128xf32>
    %cst_6 = arith.constant dense<0.000000e+00> : vector<8xf32>
    %11 = vector.multi_reduction <add>, %10, %cst_6 [1] : vector<8x128xf32> to vector<8xf32>
    %12 = vector.shape_cast %11 : vector<8xf32> to vector<8x1xf32>
    %13 = vector.broadcast %12 : vector<8x1xf32> to vector<8x128xf32>
    %14 = arith.divf %10, %13 : vector<8x128xf32>
    %c0_7 = arith.constant 0 : index
    %c0_8 = arith.constant 0 : index
    %15 = vector.load %arg4[%c0_7, %c0_8] : memref<8x128xf32, #tpu.memory_space<vmem>>, vector<8x128xf32>
    tpu.vector_store %arg4[%c0_7, %c0_8], %14 {strides = array<i32>} : memref<8x128xf32, #tpu.memory_space<vmem>>, vector<8x128xf32>,
    return
  }
  func.func @transform_0(%arg0: i32) -> (i32, i32) {
    %c0_i32 = arith.constant 0 : i32
    %c0_i32_0 = arith.constant 0 : i32
    return %arg0, %c0_i32 : i32, i32
  }
  func.func @transform_1(%arg0: i32) -> (i32, i32) {
    %c0_i32 = arith.constant 0 : i32
    %c0_i32_0 = arith.constant 0 : i32
    %c0_i32_1 = arith.constant 0 : i32
    return %c0_i32, %c0_i32_0 : i32, i32
  }
  func.func @transform_2(%arg0: i32) -> (i32, i32) {
    %c0_i32 = arith.constant 0 : i32
    %c0_i32_0 = arith.constant 0 : i32
    %c0_i32_1 = arith.constant 0 : i32
    return %c0_i32, %c0_i32_0 : i32, i32
  }
  func.func @transform_3(%arg0: i32) -> (i32, i32) {
    %c0_i32 = arith.constant 0 : i32
    %c0_i32_0 = arith.constant 0 : i32
    return %arg0, %c0_i32 : i32, i32
  }
}

</mosaic_0001>

<bundles_post_ra>
// kernel: policy_network_forward.1
= control target key start
LH: loop header
LB: loop body
LE: loop exit
PB: predicated region body
PF: predicated region fallthrough
CT: control target
= control target key end

     0   :  { %8 = vsyncpa [#allocation3], 0  ;;  %s254_s0 = inlined_call_operand.vmem [shape: bf16[8,32], index: 0, kind: input, shape index: {}]   ;;  %s255_s1 = inlined_call_operand.hbm [shape: bf16[32,128], index: 1, kind: input, shape index: {}]   ;;  %s256_s2 = inlined_call_operand.vmem [shape: f32[1,128], index: 2, kind: input, shape index: {}]   ;;  %s257_s3 = inlined_call_operand.hbm [shape: f32[8,128], index: 3, kind: output, shape index: {}]  }
   0x1   :  { %9 = vsyncpa [#allocation4], 0  ;;  %s198_s12 = smov [#allocation2]   ;;  %s150_s16 = scalar_lea.hbm %s255_s1, 256 }
   0x2   :  { %s17_s13 = sshll.u32 %s198_s12, 4  ;;  %p151_p0 = scmp.ne.s32.totalorder %s255_s1, %s150_s16  ;;  %s18_s13 = int_to_ptr.vmem [resolvable:$true] %s17_s13 }
   0x3   :  { %p154_p1 = scmp.lt.u32.totalorder %s150_s16, %s255_s1 }
   0x5   :  { %p156_p2 = pnand %p154_p1, %p151_p0 }
   0x7   :  { %159 = shalt.err (!%p156_p2)
}
   0x8   :  { %s160_s21 = scalar_lea.vmem %s18_s13, 256  ;;  %p165_p4 = scmp.lt.s32.totalorder %s18_s13, %s18_s13 }
   0x9   :  { %p161_p3 = scmp.ne.s32.totalorder %s18_s13, %s160_s21  ;;  %p166_p5 = scmp.lt.s32.totalorder %s160_s21, %s160_s21 }
   0xb   :  { %p167_p6 = por %p166_p5, %p165_p4 }
   0xd   :  { %p168_p7 = pnand %p167_p6, %p161_p3 }
   0xf   :  { %171 = shalt.err (!%p168_p7)
}
  0x10   :  { %s199_s22 = smov 64   ;;  %s200_s23 = smov 4  }
  0x11   :  { %23 = dma.hbm_to_vmem [thread:$0]  %s255_s1, 256, %s18_s13, [#allocation3], %s199_s22, %s199_s22, %s200_s23  }
  0x12   :  { %194 = dma.done.wait [#allocation3], 256  }
  0x13   :  { %195 = vsyncadd [#allocation3], 4294967040  ;;  %v201_v0 = vmov 0.0   ;;  %vm202_vm0 = vmmov 0   ;;  %v144_v1 = vld [vmem:[#allocation2] sm:$0xff]   ;;  %v145_v2 = vld [vmem:[#allocation2 + $0x8] sm:$0xff]  }
  0x14   :  { %130 = vmatprep.subr.bf16.mxu0 %v201_v0  ;;  %134 = vmatprep.mubr.msk.bf16.mxu0 %vm202_vm0, %v201_v0  ;;  %v30_v3 = vld [vmem:[%s254_s0] sm:$0xf]  ;;  %vm54_vm1 = vcmask 261120   ;;  %s203_s0 = smov [#allocation5]  }
  0x15   :  { %131 = vmatpush3.bf16.msra.mxu0 %v144_v1  ;;  %v123_v4 = vld [vmem:[%s256_s2] ss:$0 sm:$0xff]  ;;  %s114_s1 = sshll.u32 %s203_s0, 4  ;;  %s115_s1 = int_to_ptr.vmem [resolvable:$true] %s114_s1 }
  0x16   :  { %132 = vmatprep.subr.bf16.mxu0 %v201_v0  ;;  %s172_s2 = scalar_lea.vmem %s115_s1, 128  ;;  %p177_p9 = scmp.lt.s32.totalorder %s115_s1, %s115_s1 }
  0x17   :  { %p173_p8 = scmp.ne.s32.totalorder %s115_s1, %s172_s2  ;;  %p178_p10 = scmp.lt.s32.totalorder %s172_s2, %s172_s2 }
  0x19   :  { %133 = vmatpush3.bf16.msra.mxu0 %v145_v2  ;;  %p179_p11 = por %p178_p10, %p177_p9 }
  0x1b   :  { %p180_p12 = pnand %p179_p11, %p173_p8 }
  0x1c   :  { %135 = vmatmul.mubr.msk.bf16.vlgmr.msra.gmra.mrb[0].mxu0 %vm54_vm1, %v30_v3 }
  0xef   :  { %v92_v5 = vpop.f32.mrb[0].mxu0 }
  0xf0   :  { %v93_v6 = vadd.f32 %v123_v4, %v92_v5  ;;  %v136_v7 = vpop.f32.mrb[1].mxu0 }
  0xf1   :  { %v95_v8 = vpop.f32.mrb[2].mxu0 }
  0xf2   :  { %98 = vmax.xlane.f32.xlu0 %v93_v6  ;;  %v137_v9 = vpop.f32.mrb[3].mxu0 }
 0x17f   :  { %v99_v10 = vpop.xlane.xlu0 %98 }
 0x180   :  { %v100_v11 = vsub.f32 %v93_v6, %v99_v10 }
 0x182   :  { %v101_v12 = vmul.f32 1.442695, %v100_v11 }
 0x184   :  { %146 = vpow2.f32 %v101_v12 }
 0x18e   :  { %v147_v13 = vpop.eup %146 }
 0x18f   :  { %103 = vadd.xlane.f32.xlu0 %v147_v13 }
 0x21c   :  { %v104_v14 = vpop.xlane.xlu0 %103 }
 0x21d   :  { %148 = vrcp.f32 %v104_v14 }
 0x227   :  { %v149_v15 = vpop.eup %148 }
 0x228   :  { %v106_v16 = vmul.f32 %v149_v15, %v147_v13 }
 0x22a   :  { %107 = vst [vmem:[#allocation5] sm:$0xff] %v106_v16 }
 0x22b   :  { %183 = shalt.err (!%p180_p12)
}
 0x22c   :  { %s184_s5 = scalar_lea.hbm %s257_s3, 128 }
 0x22d   :  { %p185_p13 = scmp.ne.s32.totalorder %s257_s3, %s184_s5  ;;  %p188_p0 = scmp.lt.u32.totalorder %s184_s5, %s257_s3 }
 0x22f   :  { %p190_p1 = pnand %p188_p0, %p185_p13 }
 0x231   :  { %193 = shalt.err (!%p190_p1)
}
 0x232   :  { %117 = dma.vmem_to_hbm [thread:$0]  %s115_s1, 128, %s257_s3, [#allocation4]  }
 0x233   :  { %196 = dma.done.wait [#allocation4], 128  }
 0x234   :  { %197 = vsyncadd [#allocation4], 4294967168 }
 0x235   :  { %121 = vsyncpa [#allocation3], 1 }
 0x236   :  { %122 = vsyncpa [#allocation4], 1 }

</bundles_post_ra>
